<compile_context>
chip_gen: v7x
topology: tpu7x:2x2x1
jax: 0.10.0
libtpu: 0.0.40
codegen_flags: <defaults>
</compile_context>

<pallas_src>
import jax
import jax.numpy as jnp
from jax.experimental import pallas as pl
from jax.experimental.pallas import tpu as pltpu

_LANE_CANDIDATES = (1024, 512, 256, 128)     # preferred lane-dense widths (multiples of 128)
_SINGLE_BLOCK_BYTES = 6 * 1024 * 1024        # below this, one grid point (no per-step overhead)


def _identity_kernel(x_ref, o_ref):
    # Elementwise identity: load the whole tile and store it back out.
    o_ref[...] = x_ref[...]


def _pick_block_bytes():
    """Generation-aware target bytes per block (safe fallback if query fails)."""
    try:
        kind = jax.devices()[0].device_kind.lower()
    except Exception:
        return 4 * 1024 * 1024
    if "v7" in kind:
        return 8 * 1024 * 1024   # 3.2 TB/s HBM: amortize ~0.35 us/step overhead
    if "v6" in kind:
        return 6 * 1024 * 1024
    return 3 * 1024 * 1024       # v5e / unknown: stay modest


def _lane_dense_2d(x):
    """Reshape x to a lane-dense (rows, cols) view without moving data."""
    total = x.size
    for cand in _LANE_CANDIDATES:
        if total % cand == 0:
            return x.reshape(total // cand, cand)
    # Awkward total (not a multiple of 128): fuse trailing axes until the fused
    # width reaches >= 128 so stores stay mostly full-width.  The block's last
    # dim equals the full array dim, so the (8,128) divisibility rule is exempt.
    cols = 1
    k = x.ndim
    while k > 0 and cols < 128:
        k -= 1
        cols *= x.shape[k]
    return x.reshape(total // cols, cols)


def _copy_2d(x2d, donate):
    """Pipelined identity copy of a 2D (rows, cols) array."""
    rows, cols = x2d.shape
    itemsize = x2d.dtype.itemsize
    nbytes = x2d.size * itemsize
    block_bytes = _pick_block_bytes()

    if nbytes <= _SINGLE_BLOCK_BYTES:
        tile_rows = rows                                  # single-block fast path
    else:
        # Sublane pack: 8 for 4-byte, 16 for 2-byte, 32 for 1-byte dtypes.
        pack = max(8, 32 // max(1, itemsize))
        row_bytes = cols * itemsize
        rows_target = max(pack, (block_bytes // row_bytes) // pack * pack)
        tile_rows = min(rows, rows_target)

    tile_bytes = tile_rows * cols * itemsize
    # in + out specs, double-buffered => ~4x tile, plus headroom for internals.
    vmem_limit = min(4 * tile_bytes + (8 << 20), 48 << 20)

    grid = (pl.cdiv(rows, tile_rows),)
    block = (tile_rows, cols)

    extra_kwargs = {}
    if donate:
        # Only alias when the caller actually donates x; otherwise XLA would
        # insert a defensive copy of the input to satisfy the alias.
        extra_kwargs["input_output_aliases"] = {0: 0}

    return pl.pallas_call(
        _identity_kernel,
        out_shape=jax.ShapeDtypeStruct((rows, cols), x2d.dtype),
        grid_spec=pltpu.PrefetchScalarGridSpec(
            num_scalar_prefetch=0,
            grid=grid,
            in_specs=[pl.BlockSpec(block, lambda i: (i, 0))],
            out_specs=pl.BlockSpec(block, lambda i: (i, 0)),
        ),
        cost_estimate=pl.CostEstimate(
            flops=0, transcendentals=0, bytes_accessed=2 * nbytes),
        compiler_params=pltpu.CompilerParams(
            dimension_semantics=("parallel",),
            vmem_limit_bytes=vmem_limit,
        ),
        **extra_kwargs,
    )(x2d)


def variable_size_inspector(x, *, materialize=False, donate=False):
    """Pallas implementation of VariableSizeInspector.forward (identity).

    Default path returns `x` unchanged — zero HBM traffic, which no copy kernel
    can beat.  Pass `materialize=True` to force a fresh output buffer via the
    Pallas copy kernel; pass `donate=True` only when the input buffer is
    actually donated (enables input/output aliasing).
    """
    if not materialize:
        return x

    orig_shape = x.shape
    if x.size == 0:
        return x                                          # nothing to lower
    if x.ndim == 0:
        return _copy_2d(x.reshape(1, 1), donate).reshape(orig_shape)

    x2d = _lane_dense_2d(x)
    return _copy_2d(x2d, donate).reshape(orig_shape)


if __name__ == "__main__":
    key = jax.random.PRNGKey(0)
    # Small NCHW input consistent with a conv-style pipeline: batch=2, channels=4, 16x16 spatial.
    x = jax.random.normal(key, (2, 4, 16, 16), dtype=jnp.float32)

    # Structural fast path: identity returns the same array, no kernel launch.
    y_fast = variable_size_inspector(x)
    jax.block_until_ready(y_fast)
    assert y_fast.shape == x.shape and y_fast.dtype == x.dtype
    assert bool(jnp.all(y_fast == x))

    # Materializing path: exercises the Pallas copy kernel (lane-dense, pipelined).
    y_copy = variable_size_inspector(x, materialize=True)
    jax.block_until_ready(y_copy)
    assert y_copy.shape == x.shape and y_copy.dtype == x.dtype
    assert bool(jnp.all(y_copy == x))

    # Extra coverage: bf16 dtype and an odd shape that exercises the fallback reshape.
    xb = jax.random.normal(key, (2, 4, 16, 16), dtype=jnp.bfloat16)
    yb = variable_size_inspector(xb, materialize=True)
    jax.block_until_ready(yb)
    assert yb.shape == xb.shape and yb.dtype == xb.dtype and bool(jnp.all(yb == xb))

    xo = jax.random.normal(key, (3, 5, 7), dtype=jnp.float32)   # 105 elems, not a multiple of 128
    yo = variable_size_inspector(xo, materialize=True)
    jax.block_until_ready(yo)
    assert yo.shape == xo.shape and yo.dtype == xo.dtype and bool(jnp.all(yo == xo))

    print("KERNEL_OK")
</pallas_src>

<mosaic_0001>
module attributes {stable_mosaic.version = 11 : i64} {
  func.func @_identity_kernel(%arg0: i32, %arg1: memref<2x1024xf32, #tpu.memory_space<vmem>>, %arg2: memref<2x1024xf32, #tpu.memory_space<vmem>>) attributes {dimension_semantics = [#tpu.dimension_semantics<parallel>], iteration_bounds = array<i64: 1>, scalar_prefetch = 0 : i64, scratch_operands = 0 : i64, tpu.core_type = #tpu.core_type<tc>, window_params = [{transform_indices = @transform_0, window_bounds = array<i64: 2, 1024>}, {transform_indices = @transform_1, window_bounds = array<i64: 2, 1024>}]} {
    %c0 = arith.constant 0 : index
    %c0_0 = arith.constant 0 : index
    %0 = vector.load %arg1[%c0, %c0_0] : memref<2x1024xf32, #tpu.memory_space<vmem>>, vector<2x1024xf32>
    %c0_1 = arith.constant 0 : index
    %c0_2 = arith.constant 0 : index
    %1 = vector.load %arg2[%c0_1, %c0_2] : memref<2x1024xf32, #tpu.memory_space<vmem>>, vector<2x1024xf32>
    tpu.vector_store %arg2[%c0_1, %c0_2], %0 {strides = array<i32>} : memref<2x1024xf32, #tpu.memory_space<vmem>>, vector<2x1024xf32>,
    return
  }
  func.func @transform_0(%arg0: i32) -> (i32, i32) {
    %c0_i32 = arith.constant 0 : i32
    %c0_i32_0 = arith.constant 0 : i32
    return %arg0, %c0_i32 : i32, i32
  }
  func.func @transform_1(%arg0: i32) -> (i32, i32) {
    %c0_i32 = arith.constant 0 : i32
    %c0_i32_0 = arith.constant 0 : i32
    return %arg0, %c0_i32 : i32, i32
  }
}

</mosaic_0001>

<bundles_post_ra>
// kernel: tpu_custom_call.1
= control target key start
LH: loop header
LB: loop body
LE: loop exit
PB: predicated region body
PF: predicated region fallthrough
CT: control target
= control target key end

     0   :  { %6 = vsyncpa [#allocation3], 0  ;;  %s126_s0 = inlined_call_operand.hbm [shape: f32[2,1024], index: 0, kind: input, shape index: {}]   ;;  %s127_s1 = inlined_call_operand.hbm [shape: f32[2,1024], index: 1, kind: output, shape index: {}]  }
   0x1   :  { %7 = vsyncpa [#allocation4], 0  ;;  %s90_s6 = smov [#allocation2]   ;;  %s42_s10 = scalar_lea.hbm %s126_s0, 256 }
   0x2   :  { %s14_s7 = sshll.u32 %s90_s6, 4  ;;  %p43_p0 = scmp.ne.s32.totalorder %s126_s0, %s42_s10  ;;  %s15_s7 = int_to_ptr.vmem [resolvable:$true] %s14_s7 }
   0x3   :  { %p46_p1 = scmp.lt.u32.totalorder %s42_s10, %s126_s0 }
   0x5   :  { %p48_p2 = pnand %p46_p1, %p43_p0 }
   0x7   :  { %51 = shalt.err (!%p48_p2)
}
   0x8   :  { %s52_s15 = scalar_lea.vmem %s15_s7, 256  ;;  %p57_p4 = scmp.lt.s32.totalorder %s15_s7, %s15_s7 }
   0x9   :  { %p53_p3 = scmp.ne.s32.totalorder %s15_s7, %s52_s15  ;;  %p58_p5 = scmp.lt.s32.totalorder %s52_s15, %s52_s15 }
   0xb   :  { %p59_p6 = por %p58_p5, %p57_p4 }
   0xd   :  { %p60_p7 = pnand %p59_p6, %p53_p3 }
   0xf   :  { %63 = shalt.err (!%p60_p7)
}
  0x10   :  { %17 = dma.hbm_to_vmem [thread:$0]  %s126_s0, 256, %s15_s7, [#allocation3]  }
  0x11   :  { %86 = dma.done.wait [#allocation3], 256  }
  0x12   :  { %87 = vsyncadd [#allocation3], 4294967040  ;;  %s91_s18 = smov [#allocation5]   ;;  %v21_v0 = vld [vmem:[#allocation2] sm:$0xff]  ;;  %v22_v1 = vld [vmem:[#allocation2 + $0x8] sm:$0xff] }
  0x13   :  { %s31_s19 = sshll.u32 %s91_s18, 4  ;;  %23 = vst [vmem:[#allocation5] sm:$0xff] %v21_v0  ;;  %24 = vst [vmem:[#allocation5 + $0x8] sm:$0xff] %v22_v1  ;;  %s32_s19 = int_to_ptr.vmem [resolvable:$true] %s31_s19 }
  0x14   :  { %s64_s20 = scalar_lea.vmem %s32_s19, 256  ;;  %p69_p9 = scmp.lt.s32.totalorder %s32_s19, %s32_s19 }
  0x15   :  { %p65_p8 = scmp.ne.s32.totalorder %s32_s19, %s64_s20  ;;  %p70_p10 = scmp.lt.s32.totalorder %s64_s20, %s64_s20 }
  0x17   :  { %p71_p11 = por %p70_p10, %p69_p9 }
  0x19   :  { %p72_p12 = pnand %p71_p11, %p65_p8 }
  0x1b   :  { %75 = shalt.err (!%p72_p12)
}
  0x1c   :  { %s76_s0 = scalar_lea.hbm %s127_s1, 256 }
  0x1d   :  { %p77_p13 = scmp.ne.s32.totalorder %s127_s1, %s76_s0  ;;  %p80_p0 = scmp.lt.u32.totalorder %s76_s0, %s127_s1 }
  0x1f   :  { %p82_p1 = pnand %p80_p0, %p77_p13 }
  0x21   :  { %85 = shalt.err (!%p82_p1)
}
  0x22   :  { %34 = dma.vmem_to_hbm [thread:$0]  %s32_s19, 256, %s127_s1, [#allocation4]  }
  0x23   :  { %88 = dma.done.wait [#allocation4], 256  }
  0x24   :  { %89 = vsyncadd [#allocation4], 4294967040 }
  0x25   :  { %38 = vsyncpa [#allocation3], 1 }
  0x26   :  { %39 = vsyncpa [#allocation4], 1 }

</bundles_post_ra>
